<compile_context>
chip_gen: v7x
topology: tpu7x:2x2x1
jax: 0.10.0
libtpu: 0.0.40
codegen_flags: <defaults>
</compile_context>

<pallas_src>
import functools

import jax
import jax.numpy as jnp
from jax.experimental import pallas as pl
from jax.experimental.pallas import tpu as pltpu


def _round_up(x, m):
    return ((x + m - 1) // m) * m


# ----------------------------------------------------------------------------
# Pallas matmul kernels: C = tanh(A @ B + bias), bf16 inputs, f32 accumulate.
# ----------------------------------------------------------------------------
def _matmul_bias_tanh_single_k(a_ref, b_ref, bias_ref, o_ref):
    """Whole K in one step: no scratch accumulator needed."""
    acc = jnp.dot(a_ref[...], b_ref[...], preferred_element_type=jnp.float32)
    o_ref[...] = jnp.tanh(acc + bias_ref[...]).astype(o_ref.dtype)


def _matmul_bias_tanh_multi_k(a_ref, b_ref, bias_ref, o_ref, acc_ref):
    """K tiled over the (arbitrary) second grid axis; f32 accumulator."""
    @pl.when(pl.program_id(1) == 0)
    def _():
        acc_ref[...] = jnp.zeros_like(acc_ref)

    acc_ref[...] += jnp.dot(a_ref[...], b_ref[...],
                            preferred_element_type=jnp.float32)

    @pl.when(pl.program_id(1) == pl.num_programs(1) - 1)
    def _():
        r = acc_ref[...] + bias_ref[...]           # f32 epilogue (v5e-friendly)
        o_ref[...] = jnp.tanh(r).astype(o_ref.dtype)


def matmul_bias_tanh(a_bf16, b_pad_bf16, bias_pad_f32, out_dtype=jnp.float32):
    """(M, K) bf16 @ (K, Np) bf16 + bias[1, Np] f32, fused tanh.

    Np must already be a multiple of 128 (weights are pre-padded at init).
    Returns (M, Np) in out_dtype.
    """
    M, K = a_bf16.shape
    Kb, Np = b_pad_bf16.shape
    assert K == Kb and Np % 128 == 0

    # --- K tiling: single full-K step (no padding / no extra HBM copies)
    #     unless K is large enough to need tiling.
    if K <= 2048:
        tk, Kp = K, K
    else:
        tk = 512
        Kp = _round_up(K, tk)
        a_bf16 = jnp.pad(a_bf16, ((0, 0), (0, Kp - K)))
        b_pad_bf16 = jnp.pad(b_pad_bf16, ((0, Kp - K), (0, 0)))

    # --- M tiling: keep >= 2 parallel M tiles when M is big enough (v7x has
    #     2 TensorCores); otherwise one tile covering the whole (small) M.
    tm = 256 if M >= 512 else _round_up(max(M, 8), 8)
    Mp = _round_up(M, tm)
    if Mp != M:
        a_bf16 = jnp.pad(a_bf16, ((0, Mp - M), (0, 0)))

    kgrid = Kp // tk
    common = dict(
        out_shape=jax.ShapeDtypeStruct((Mp, Np), out_dtype),
        compiler_params=pltpu.CompilerParams(
            dimension_semantics=("parallel", "arbitrary"),
            vmem_limit_bytes=48 * 1024 * 1024),
    )
    in_specs = [
        pl.BlockSpec((tm, tk), lambda i, k: (i, k)),
        pl.BlockSpec((tk, Np), lambda i, k: (k, 0)),
        pl.BlockSpec((1, Np), lambda i, k: (0, 0)),
    ]
    out_specs = pl.BlockSpec((tm, Np), lambda i, k: (i, 0))

    if kgrid == 1:
        out = pl.pallas_call(
            _matmul_bias_tanh_single_k,
            grid_spec=pltpu.PrefetchScalarGridSpec(
                num_scalar_prefetch=0,
                grid=(Mp // tm, 1),
                in_specs=in_specs,
                out_specs=out_specs),
            **common,
        )(a_bf16, b_pad_bf16, bias_pad_f32)
    else:
        out = pl.pallas_call(
            _matmul_bias_tanh_multi_k,
            grid_spec=pltpu.PrefetchScalarGridSpec(
                num_scalar_prefetch=0,
                grid=(Mp // tm, kgrid),
                in_specs=in_specs,
                out_specs=out_specs,
                scratch_shapes=[pltpu.VMEM((tm, Np), jnp.float32)]),
            **common,
        )(a_bf16, b_pad_bf16, bias_pad_f32)

    return out[:M, :]


# ----------------------------------------------------------------------------
# Conv2d(k=3, s=1, p=1, reflect) -> im2col glue + Pallas matmul (hot path).
# ----------------------------------------------------------------------------
def _im2col_3x3_reflect(x_nhwc):
    """Reflect-pad by 1 and extract 3x3 patches.

    Returns (N*H*W, 9*C) in bf16 (matches the (kh, kw, Cin) flattening order
    of the weight matrix), emitted directly in the K layout the kernel wants
    so no extra padded copy is materialized.
    """
    N, H, W, C = x_nhwc.shape
    xp = jnp.pad(x_nhwc, ((0, 0), (1, 1), (1, 1), (0, 0)), mode="reflect")
    taps = [xp[:, di:di + H, dj:dj + W, :]
            for di in range(3) for dj in range(3)]
    cols = jnp.stack(taps, axis=3)                    # (N, H, W, 9, C)
    return cols.reshape(N * H * W, 9 * C).astype(jnp.bfloat16)


# ----------------------------------------------------------------------------
# Parameters (shapes from Generator_Image.__init__; weights_init: N(0, 0.02)).
# Weight/bias MXU-lane padding is done ONCE here (hoisted out of the forward).
# ----------------------------------------------------------------------------
def init_params(key, in_dim):
    kw, kb = jax.random.split(key)
    # Conv weight ~ N(0, 0.02) per weights_init; stored (kh, kw, Cin, Cout).
    w = 0.02 * jax.random.normal(kw, (3, 3, in_dim, 3), jnp.float32)
    # Bias untouched by weights_init -> PyTorch default uniform(-1/sqrt(fan_in), ..)
    fan_in = 9 * in_dim
    bound = 1.0 / (fan_in ** 0.5)
    b = jax.random.uniform(kb, (3,), jnp.float32, -bound, bound)

    K = 9 * in_dim
    w_pad = jnp.zeros((K, 128), jnp.bfloat16).at[:, :3].set(
        w.reshape(K, 3).astype(jnp.bfloat16))
    bias_pad = jnp.zeros((1, 128), jnp.float32).at[0, :3].set(b)
    return {"w_pad": w_pad, "bias_pad": bias_pad, "cout": 3}


# ----------------------------------------------------------------------------
# Forward pass (mirrors Generator_Image.forward): conv3x3(reflect) -> tanh.
# ----------------------------------------------------------------------------
def generator_image_forward(params, x_nchw):
    # External layout is PyTorch NCHW; kernel works on NHWC (channels on lanes).
    x = jnp.transpose(x_nchw, (0, 2, 3, 1)).astype(jnp.float32)
    N, H, W, _ = x.shape

    cols = _im2col_3x3_reflect(x)                               # (N*H*W, 9*Cin) bf16
    y = matmul_bias_tanh(cols, params["w_pad"], params["bias_pad"])  # (M, 128) f32
    y = y[:, :params["cout"]].reshape(N, H, W, params["cout"])
    return jnp.transpose(y, (0, 3, 1, 2))                       # back to NCHW


if __name__ == "__main__":
    IN_DIM, BATCH, SIZE = 8, 2, 16

    key = jax.random.PRNGKey(0)
    kp, kx = jax.random.split(key)
    params = init_params(kp, IN_DIM)
    x = jax.random.normal(kx, (BATCH, IN_DIM, SIZE, SIZE), jnp.float32)  # NCHW

    fwd = jax.jit(functools.partial(generator_image_forward, params))
    y = fwd(x)
    jax.block_until_ready(y)

    assert y.shape == (BATCH, 3, SIZE, SIZE), y.shape
    assert bool(jnp.all(jnp.isfinite(y)))
    assert bool(jnp.all(jnp.abs(y) <= 1.0))      # tanh range
    print("KERNEL_OK")
</pallas_src>

<mosaic_0001>
module attributes {stable_mosaic.version = 11 : i64} {
  func.func @_matmul_bias_tanh_single_k(%arg0: i32, %arg1: i32, %arg2: memref<256x72xbf16, #tpu.memory_space<vmem>>, %arg3: memref<72x128xbf16, #tpu.memory_space<vmem>>, %arg4: memref<1x128xf32, #tpu.memory_space<vmem>>, %arg5: memref<256x128xf32, #tpu.memory_space<vmem>>) attributes {dimension_semantics = [#tpu.dimension_semantics<parallel>, #tpu.dimension_semantics<arbitrary>], iteration_bounds = array<i64: 2, 1>, scalar_prefetch = 0 : i64, scratch_operands = 0 : i64, tpu.core_type = #tpu.core_type<tc>, window_params = [{transform_indices = @transform_0, window_bounds = array<i64: 256, 72>}, {transform_indices = @transform_1, window_bounds = array<i64: 72, 128>}, {pipeline_mode = #tpu.pipeline_mode<synchronous>, transform_indices = @transform_2, window_bounds = array<i64: 1, 128>}, {transform_indices = @transform_3, window_bounds = array<i64: 256, 128>}]} {
    %c0 = arith.constant 0 : index
    %c0_0 = arith.constant 0 : index
    %0 = vector.load %arg2[%c0, %c0_0] : memref<256x72xbf16, #tpu.memory_space<vmem>>, vector<256x72xbf16>
    %c0_1 = arith.constant 0 : index
    %c0_2 = arith.constant 0 : index
    %1 = vector.load %arg3[%c0_1, %c0_2] : memref<72x128xbf16, #tpu.memory_space<vmem>>, vector<72x128xbf16>
    %cst = arith.constant dense<0.000000e+00> : vector<256x128xf32>
    %2 = tpu.matmul %0, %1, %cst {dimension_numbers = #tpu.dot_dimension_numbers<[1], [0], [0], [1], [0, 0, 1, 1], [], []>} : vector<256x72xbf16>, vector<72x128xbf16>, vector<256x128xf32> -> vector<256x128xf32>
    %c0_3 = arith.constant 0 : index
    %c0_4 = arith.constant 0 : index
    %3 = vector.load %arg4[%c0_3, %c0_4] : memref<1x128xf32, #tpu.memory_space<vmem>>, vector<1x128xf32>
    %4 = vector.broadcast %3 : vector<1x128xf32> to vector<256x128xf32>
    %5 = arith.addf %2, %4 : vector<256x128xf32>
    %6 = math.tanh %5 : vector<256x128xf32>
    %c0_5 = arith.constant 0 : index
    %c0_6 = arith.constant 0 : index
    %7 = vector.load %arg5[%c0_5, %c0_6] : memref<256x128xf32, #tpu.memory_space<vmem>>, vector<256x128xf32>
    tpu.vector_store %arg5[%c0_5, %c0_6], %6 {strides = array<i32>} : memref<256x128xf32, #tpu.memory_space<vmem>>, vector<256x128xf32>,
    return
  }
  func.func @transform_0(%arg0: i32, %arg1: i32) -> (i32, i32) {
    %c0_i32 = arith.constant 0 : i32
    return %arg0, %arg1 : i32, i32
  }
  func.func @transform_1(%arg0: i32, %arg1: i32) -> (i32, i32) {
    %c0_i32 = arith.constant 0 : i32
    %c0_i32_0 = arith.constant 0 : i32
    return %arg1, %c0_i32 : i32, i32
  }
  func.func @transform_2(%arg0: i32, %arg1: i32) -> (i32, i32) {
    %c0_i32 = arith.constant 0 : i32
    %c0_i32_0 = arith.constant 0 : i32
    %c0_i32_1 = arith.constant 0 : i32
    return %c0_i32, %c0_i32_0 : i32, i32
  }
  func.func @transform_3(%arg0: i32, %arg1: i32) -> (i32, i32) {
    %c0_i32 = arith.constant 0 : i32
    %c0_i32_0 = arith.constant 0 : i32
    return %arg0, %c0_i32 : i32, i32
  }
}

</mosaic_0001>

<bundles_post_ra>
// kernel: generator_image_forward.1
= control target key start
LH: loop header
LB: loop body
LE: loop exit
PB: predicated region body
PF: predicated region fallthrough
CT: control target
= control target key end

     0   :  { %s1014_s12 = smov 0   ;;  %s1016_s13 = smov 0   ;;  %s1171_s0 = inlined_call_operand.vmem [shape: bf16[512,72], index: 0, kind: input, shape index: {}]   ;;  %s1172_s1 = inlined_call_operand.vmem [shape: bf16[72,128], index: 1, kind: input, shape index: {}]   ;;  %s1173_s2 = inlined_call_operand.vmem [shape: f32[1,128], index: 2, kind: input, shape index: {}]   ;;  %s1174_s3 = inlined_call_operand.vmem [shape: f32[512,128], index: 3, kind: output, shape index: {}]  }
   0x1   :  { %s1018_s14 = smov 0  }
   0x2 LB: > { %s25_s15 = sadd.s32 1, %s988_s13  ;;  %p741_p0 = scmp.ge.s32.totalorder %s992_s14, 1  ;;  %s992_s14 = sphi %s1018_s14, %s13_s14   ;;  %s988_s13 = sphi %s1016_s13, %s1176_s13   ;;  %s984_s12 = sphi %s1014_s12, %s1175_s12  }
   0x3   : > { %p27_p1 = scmp.ge.s32.totalorder %s25_s15, 2  ;;  %p166_p2 = scmp.lt.s32.totalorder %s992_s14, 3 }
   0x5   : > { %s1178_s15 = smov (%p27_p1, %s25_s15), 0  ;;  %p167_p3 = pnand %p741_p0, %p166_p2 }
   0x6   : > { %v885_v0 = vld [vmem:[%s1172_s1] sm:$0xff] (!%p167_p3)   ;;  %v886_v1 = vld [vmem:[%s1172_s1 + $0x8] sm:$0xff] (!%p167_p3)   ;;  %s742_s20 = sshll.u32 (!%p167_p3), %s984_s12, 5  ;;  %v887_v2 = vld [vmem:[%s1172_s1 + $0x10] sm:$0xff] (!%p167_p3)   ;;  %vm375_vm0 = vcmask (!%p167_p3), 588800   ;;  %vm424_vm1 = vcmask (!%p167_p3), 1043456  }
   0x7   : > { %170 = sbr.rel (%p167_p3) target bundleno = 287 (0x11f), region = 32  ;;  %807 = vmatprep.subr.bf16.mxu0 (!%p167_p3), %v885_v0  ;;  %849 = vmatprep.subr.bf16.mxu1 (!%p167_p3), %v885_v0  ;;  %p199_p4 = scmp.lt.s32.totalorder (!%p167_p3), %s742_s20, 63  ;;  %v888_v3 = vld [vmem:[%s1172_s1 + $0x18] sm:$0xff] (!%p167_p3)   ;;  %v889_v6 = vld [vmem:[%s1172_s1 + $0x20] ss:$0 sps:$4 sm:$0xff] (!%p167_p3)  }
   0x8   : > { %808 = vmatpush3.bf16.msra.mxu0 (!%p167_p3), %v885_v0  ;;  %854 = vmatpush3.bf16.msra.mxu1 (!%p167_p3), %v885_v0  ;;  %v426_v7 = vsel (!%p167_p3), %vm424_vm1, %v889_v6, 0  ;;  %v1090_v22 = vld [vmem:[%s1173_s2] ss:$0 sm:$0xff] (!%p167_p3) }
   0x9   : > { %809 = vmatprep.subr.bf16.mxu0 (!%p167_p3), %v886_v1  ;;  %850 = vmatprep.subr.bf16.mxu1 (!%p167_p3), %v886_v1 }
   0xc   : > { %810 = vmatpush3.bf16.msra.mxu0 (!%p167_p3), %v886_v1  ;;  %855 = vmatpush3.bf16.msra.mxu1 (!%p167_p3), %v886_v1 }
   0xd   : > { %811 = vmatprep.subr.bf16.mxu0 (!%p167_p3), %v887_v2  ;;  %851 = vmatprep.subr.bf16.mxu1 (!%p167_p3), %v887_v2 }
   0xe   : > { %s1180_s20 = smov (!%p199_p4, %s742_s20), 63 }
   0xf   : > { %s743_s23 = sshll.u32 %s1180_s20, 2  ;;  %s745_s6 = sshll.u32 %s1180_s20, 3 }
  0x10   : > { %s1050_s28 = scalar_lea.vmem %s1171_s0, %s743_s23  ;;  %812 = vmatpush3.bf16.msra.mxu0 %v887_v2  ;;  %856 = vmatpush3.bf16.msra.mxu1 %v887_v2  ;;  %s1108_s9 = scalar_lea.vmem %s1174_s3, %s745_s6 }
  0x11   : > { %v890_v4 = vld [vmem:[%s1050_s28] sm:$0xff]   ;;  %813 = vmatprep.subr.bf16.mxu0 %v888_v3  ;;  %852 = vmatprep.subr.bf16.mxu1 %v888_v3  ;;  %v892_v8 = vld [vmem:[%s1050_s28 + $0x8] sm:$0xff]   ;;  %v894_v10 = vld [vmem:[%s1050_s28 + $0x10] sm:$0xff]  }
  0x12   : > { %v891_v5 = vld [vmem:[%s1050_s28 + $0x40] sm:$0xff]   ;;  %817 = vmatprep.mubr.msk.bf16.mxu0 %vm375_vm0, %v890_v4  ;;  %v893_v9 = vld [vmem:[%s1050_s28 + $0x48] sm:$0xff]   ;;  %v895_v11 = vld [vmem:[%s1050_s28 + $0x50] sm:$0xff]  }
  0x13   : > { %833 = vmatprep.mubr.msk.bf16.mxu1 %vm375_vm0, %v891_v5  ;;  %v896_v12 = vld [vmem:[%s1050_s28 + $0x18] sm:$0xff]   ;;  %v898_v14 = vld [vmem:[%s1050_s28 + $0x20] sm:$0xff]   ;;  %v900_v16 = vld [vmem:[%s1050_s28 + $0x28] sm:$0xff]  }
  0x14   : > { %814 = vmatpush3.bf16.msra.mxu0 %v888_v3  ;;  %857 = vmatpush3.bf16.msra.mxu1 %v888_v3  ;;  %v897_v13 = vld [vmem:[%s1050_s28 + $0x58] sm:$0xff]   ;;  %v899_v15 = vld [vmem:[%s1050_s28 + $0x60] sm:$0xff]   ;;  %v901_v17 = vld [vmem:[%s1050_s28 + $0x68] sm:$0xff]  }
  0x15   : > { %859 = vmatprep.subr.msk.bf16.mxu0 %vm424_vm1, %v889_v6  ;;  %860 = vmatprep.subr.msk.bf16.mxu1 %vm424_vm1, %v889_v6  ;;  %v902_v18 = vld [vmem:[%s1050_s28 + $0x30] sm:$0xff]   ;;  %v904_v20 = vld [vmem:[%s1050_s28 + $0x38] sm:$0xff]  }
  0x16   : > { %v903_v19 = vld [vmem:[%s1050_s28 + $0x70] sm:$0xff]   ;;  %v905_v21 = vld [vmem:[%s1050_s28 + $0x78] sm:$0xff]  }
  0x18   : > { %816 = vmatpush3.bf16.msra.mxu0 %v426_v7  ;;  %858 = vmatpush3.bf16.msra.mxu1 %v426_v7 }
  0x1b   : > { %818 = vmatmul.mubr.msk.bf16.vlgmr.msra.gmra.mrb[0].mxu0 %vm375_vm0, %v892_v8  ;;  %834 = vmatmul.mubr.msk.bf16.vlgmr.msra.gmra.mrb[0].mxu1 %vm375_vm0, %v893_v9 }
  0x1c   : > { %821 = vmatprep.mubr.msk.bf16.mxu0 %vm375_vm0, %v894_v10  ;;  %837 = vmatprep.mubr.msk.bf16.mxu1 %vm375_vm0, %v895_v11 }
  0x23   : > { %822 = vmatmul.mubr.msk.bf16.gmra.mrb[4].mxu0 %vm375_vm0, %v896_v12  ;;  %838 = vmatmul.mubr.msk.bf16.gmra.mrb[4].mxu1 %vm375_vm0, %v897_v13 }
  0x24   : > { %825 = vmatprep.mubr.msk.bf16.mxu0 %vm375_vm0, %v898_v14  ;;  %841 = vmatprep.mubr.msk.bf16.mxu1 %vm375_vm0, %v899_v15 }
  0x2b   : > { %826 = vmatmul.mubr.msk.bf16.gmra.mrb[8].mxu0 %vm375_vm0, %v900_v16  ;;  %842 = vmatmul.mubr.msk.bf16.gmra.mrb[8].mxu1 %vm375_vm0, %v901_v17 }
  0x2c   : > { %829 = vmatprep.mubr.msk.bf16.mxu0 %vm375_vm0, %v902_v18  ;;  %845 = vmatprep.mubr.msk.bf16.mxu1 %vm375_vm0, %v903_v19 }
  0x33   : > { %830 = vmatmul.mubr.msk.bf16.gmra.mrb[12].mxu0 %vm375_vm0, %v904_v20  ;;  %846 = vmatmul.mubr.msk.bf16.gmra.mrb[12].mxu1 %vm375_vm0, %v905_v21 }
  0xee   : > { %v819_v23 = vpop.f32.mrb[0].mxu0  ;;  %v835_v24 = vpop.f32.mrb[0].mxu1 }
  0xef   : > { %v471_v25 = vadd.f32 %v819_v23, %v1090_v22  ;;  %v535_v26 = vadd.f32 %v835_v24, %v1090_v22  ;;  %v462_v27 = vpop.f32.mrb[1].mxu0  ;;  %v526_v28 = vpop.f32.mrb[1].mxu1 }
  0xf0   : > { %v463_v29 = vadd.f32 %v1090_v22, %v462_v27  ;;  %v527_v30 = vadd.f32 %v1090_v22, %v526_v28  ;;  %v820_v31 = vpop.f32.mrb[2].mxu0  ;;  %v836_v32 = vpop.f32.mrb[2].mxu1 }
  0xf1   : > { %906 = vtanh.f32 %v471_v25  ;;  %v474_v33 = vadd.f32 %v820_v31, %v1090_v22  ;;  %v465_v34 = vpop.f32.mrb[3].mxu0  ;;  %v529_v35 = vpop.f32.mrb[3].mxu1  ;;  %v538_v36 = vadd.f32 %v836_v32, %v1090_v22 }
  0xf2   : > { %908 = vtanh.f32 %v535_v26  ;;  %v466_v37 = vadd.f32 %v1090_v22, %v465_v34  ;;  %v530_v38 = vadd.f32 %v1090_v22, %v529_v35 }
  0xf3   : > { %910 = vtanh.f32 %v463_v29 }
  0xf4   : > { %912 = vtanh.f32 %v527_v30 }
  0xf5   : > { %914 = vtanh.f32 %v474_v33 }
  0xf6   : > { %916 = vtanh.f32 %v538_v36  ;;  %v823_v39 = vpop.f32.mrb[4].mxu0  ;;  %v839_v40 = vpop.f32.mrb[4].mxu1 }
  0xf7   : > { %918 = vtanh.f32 %v466_v37  ;;  %v487_v41 = vadd.f32 %v823_v39, %v1090_v22  ;;  %v551_v42 = vadd.f32 %v839_v40, %v1090_v22  ;;  %v478_v43 = vpop.f32.mrb[5].mxu0  ;;  %v542_v44 = vpop.f32.mrb[5].mxu1 }
  0xf8   : > { %920 = vtanh.f32 %v530_v38  ;;  %v479_v45 = vadd.f32 %v1090_v22, %v478_v43  ;;  %v543_v46 = vadd.f32 %v1090_v22, %v542_v44  ;;  %v824_v47 = vpop.f32.mrb[6].mxu0  ;;  %v840_v48 = vpop.f32.mrb[6].mxu1 }
  0xf9   : > { %922 = vtanh.f32 %v487_v41  ;;  %v490_v49 = vadd.f32 %v824_v47, %v1090_v22  ;;  %v481_v50 = vpop.f32.mrb[7].mxu0  ;;  %v545_v51 = vpop.f32.mrb[7].mxu1  ;;  %v554_v52 = vadd.f32 %v840_v48, %v1090_v22 }
  0xfa   : > { %924 = vtanh.f32 %v551_v42  ;;  %v482_v54 = vadd.f32 %v1090_v22, %v481_v50  ;;  %v546_v56 = vadd.f32 %v1090_v22, %v545_v51 }
  0xfb   : > { %v907_v53 = vpop.eup %906  ;;  %926 = vtanh.f32 %v479_v45 }
  0xfc   : > { %v909_v55 = vpop.eup %908  ;;  %623 = vst [vmem:[%s1108_s9 + $0x10] sm:$0xff] %v907_v53  ;;  %928 = vtanh.f32 %v543_v46 }
  0xfd   : > { %v911_v57 = vpop.eup %910  ;;  %639 = vst [vmem:[%s1108_s9 + $0x90] sm:$0xff] %v909_v55  ;;  %930 = vtanh.f32 %v490_v49 }
  0xfe   : > { %v913_v58 = vpop.eup %912  ;;  %621 = vst [vmem:[%s1108_s9] sm:$0xff] %v911_v57  ;;  %932 = vtanh.f32 %v554_v52  ;;  %v827_v59 = vpop.f32.mrb[8].mxu0 }
  0xff   : > { %v843_v60 = vpop.f32.mrb[8].mxu1  ;;  %v915_v61 = vpop.eup %914  ;;  %637 = vst [vmem:[%s1108_s9 + $0x80] sm:$0xff] %v913_v58  ;;  %934 = vtanh.f32 %v482_v54  ;;  %v503_v62 = vadd.f32 %v827_v59, %v1090_v22 }
 0x100   : > { %v567_v63 = vadd.f32 %v843_v60, %v1090_v22  ;;  %v494_v0 = vpop.f32.mrb[9].mxu0  ;;  %v558_v1 = vpop.f32.mrb[9].mxu1  ;;  %624 = vst [vmem:[%s1108_s9 + $0x18] sm:$0xff] %v915_v61  ;;  %936 = vtanh.f32 %v546_v56 }
 0x101   : > { %v917_v2 = vpop.eup %916  ;;  %v495_v3 = vadd.f32 %v1090_v22, %v494_v0  ;;  %v559_v4 = vadd.f32 %v1090_v22, %v558_v1  ;;  %v828_v5 = vpop.f32.mrb[10].mxu0  ;;  %938 = vtanh.f32 %v503_v62 }
 0x102   : > { %v844_v6 = vpop.f32.mrb[10].mxu1  ;;  %v919_v7 = vpop.eup %918  ;;  %640 = vst [vmem:[%s1108_s9 + $0x98] sm:$0xff] %v917_v2  ;;  %v506_v8 = vadd.f32 %v828_v5, %v1090_v22  ;;  %940 = vtanh.f32 %v567_v63 }
 0x103   : > { %v497_v9 = vpop.f32.mrb[11].mxu0  ;;  %v561_v10 = vpop.f32.mrb[11].mxu1  ;;  %622 = vst [vmem:[%s1108_s9 + $0x8] sm:$0xff] %v919_v7  ;;  %v570_v12 = vadd.f32 %v844_v6, %v1090_v22  ;;  %942 = vtanh.f32 %v495_v3 }
 0x104   : > { %v921_v11 = vpop.eup %920  ;;  %v498_v14 = vadd.f32 %v1090_v22, %v497_v9  ;;  %944 = vtanh.f32 %v559_v4  ;;  %v562_v16 = vadd.f32 %v1090_v22, %v561_v10 }
 0x105   : > { %v923_v13 = vpop.eup %922  ;;  %638 = vst [vmem:[%s1108_s9 + $0x88] sm:$0xff] %v921_v11  ;;  %946 = vtanh.f32 %v506_v8 }
 0x106   : > { %v925_v15 = vpop.eup %924  ;;  %627 = vst [vmem:[%s1108_s9 + $0x30] sm:$0xff] %v923_v13  ;;  %948 = vtanh.f32 %v570_v12  ;;  %v831_v19 = vpop.f32.mrb[12].mxu0 }
 0x107   : > { %v927_v17 = vpop.eup %926  ;;  %643 = vst [vmem:[%s1108_s9 + $0xb0] sm:$0xff] %v925_v15  ;;  %v847_v20 = vpop.f32.mrb[12].mxu1  ;;  %950 = vtanh.f32 %v498_v14  ;;  %v519_v23 = vadd.f32 %v831_v19, %v1090_v22 }
 0x108   : > { %v929_v18 = vpop.eup %928  ;;  %625 = vst [vmem:[%s1108_s9 + $0x20] sm:$0xff] %v927_v17  ;;  %v583_v24 = vadd.f32 %v847_v20, %v1090_v22  ;;  %v510_v25 = vpop.f32.mrb[13].mxu0  ;;  %952 = vtanh.f32 %v562_v16 }
 0x109   : > { %v931_v21 = vpop.eup %930  ;;  %641 = vst [vmem:[%s1108_s9 + $0xa0] sm:$0xff] %v929_v18  ;;  %v574_v26 = vpop.f32.mrb[13].mxu1  ;;  %v511_v28 = vadd.f32 %v1090_v22, %v510_v25  ;;  %954 = vtanh.f32 %v519_v23 }
 0x10a   : > { %v933_v27 = vpop.eup %932  ;;  %628 = vst [vmem:[%s1108_s9 + $0x38] sm:$0xff] %v931_v21  ;;  %v575_v29 = vadd.f32 %v1090_v22, %v574_v26  ;;  %v832_v30 = vpop.f32.mrb[14].mxu0  ;;  %956 = vtanh.f32 %v583_v24 }
 0x10b   : > { %v848_v31 = vpop.f32.mrb[14].mxu1  ;;  %v935_v32 = vpop.eup %934  ;;  %644 = vst [vmem:[%s1108_s9 + $0xb8] sm:$0xff] %v933_v27  ;;  %v522_v33 = vadd.f32 %v832_v30, %v1090_v22  ;;  %958 = vtanh.f32 %v511_v28 }
 0x10c   : > { %v513_v34 = vpop.f32.mrb[15].mxu0  ;;  %v577_v35 = vpop.f32.mrb[15].mxu1  ;;  %626 = vst [vmem:[%s1108_s9 + $0x28] sm:$0xff] %v935_v32  ;;  %v586_v37 = vadd.f32 %v848_v31, %v1090_v22  ;;  %960 = vtanh.f32 %v575_v29 }
 0x10d   : > { %v937_v36 = vpop.eup %936  ;;  %v514_v39 = vadd.f32 %v1090_v22, %v513_v34  ;;  %v578_v41 = vadd.f32 %v1090_v22, %v577_v35  ;;  %962 = vtanh.f32 %v522_v33 }
 0x10e   : > { %v939_v38 = vpop.eup %938  ;;  %642 = vst [vmem:[%s1108_s9 + $0xa8] sm:$0xff] %v937_v36  ;;  %964 = vtanh.f32 %v586_v37 }
 0x10f   : > { %v941_v40 = vpop.eup %940  ;;  %631 = vst [vmem:[%s1108_s9 + $0x50] sm:$0xff] %v939_v38  ;;  %966 = vtanh.f32 %v514_v39 }
 0x110   : > { %v943_v42 = vpop.eup %942  ;;  %647 = vst [vmem:[%s1108_s9 + $0xd0] sm:$0xff] %v941_v40  ;;  %968 = vtanh.f32 %v578_v41 }
 0x111   : > { %v945_v43 = vpop.eup %944  ;;  %629 = vst [vmem:[%s1108_s9 + $0x40] sm:$0xff] %v943_v42 }
 0x112   : > { %v947_v44 = vpop.eup %946  ;;  %645 = vst [vmem:[%s1108_s9 + $0xc0] sm:$0xff] %v945_v43 }
 0x113   : > { %v949_v45 = vpop.eup %948  ;;  %632 = vst [vmem:[%s1108_s9 + $0x58] sm:$0xff] %v947_v44 }
 0x114   : > { %v951_v22 = vpop.eup %950  ;;  %648 = vst [vmem:[%s1108_s9 + $0xd8] sm:$0xff] %v949_v45 }
 0x115   : > { %v953_v46 = vpop.eup %952  ;;  %630 = vst [vmem:[%s1108_s9 + $0x48] sm:$0xff] %v951_v22 }
 0x116   : > { %v955_v47 = vpop.eup %954  ;;  %646 = vst [vmem:[%s1108_s9 + $0xc8] sm:$0xff] %v953_v46 }
 0x117   : > { %v957_v48 = vpop.eup %956  ;;  %635 = vst [vmem:[%s1108_s9 + $0x70] sm:$0xff] %v955_v47 }
 0x118   : > { %v959_v49 = vpop.eup %958  ;;  %651 = vst [vmem:[%s1108_s9 + $0xf0] sm:$0xff] %v957_v48 }
 0x119   : > { %v961_v50 = vpop.eup %960  ;;  %633 = vst [vmem:[%s1108_s9 + $0x60] sm:$0xff] %v959_v49 }
 0x11a   : > { %v963_v51 = vpop.eup %962  ;;  %649 = vst [vmem:[%s1108_s9 + $0xe0] sm:$0xff] %v961_v50 }
 0x11b   : > { %v965_v52 = vpop.eup %964  ;;  %636 = vst [vmem:[%s1108_s9 + $0x78] sm:$0xff] %v963_v51 }
 0x11c   : > { %v967_v53 = vpop.eup %966  ;;  %652 = vst [vmem:[%s1108_s9 + $0xf8] sm:$0xff] %v965_v52 }
 0x11d   : > { %v969_v54 = vpop.eup %968  ;;  %634 = vst [vmem:[%s1108_s9 + $0x68] sm:$0xff] %v967_v53 }
 0x11e   : > { %650 = vst [vmem:[%s1108_s9 + $0xe8] sm:$0xff] %v969_v54 }
 0x11f PF: > { %s13_s14 = sadd.s32 1, %s992_s14   ;;  %s1175_s12 = smov %s988_s13 }
 0x120   : > { %p10_p5 = scmp.ge.s32.totalorder %s13_s14, 4   ;;  %s1176_s13 = smov %s1178_s15 }
 0x122   :  { %12 = sbr.rel (!%p10_p5) target bundleno = 2 (0x2), region = 65 }

</bundles_post_ra>
